<compile_context>
chip_gen: v5e
topology: v5e:2x2
jax: 0.10.0
libtpu: 0.0.40
codegen_flags: <defaults>
</compile_context>

<pallas_src>
import math
from functools import partial

import jax
import jax.numpy as jnp
from jax.experimental import pallas as pl
from jax.experimental.pallas import tpu as pltpu


def _round_up(n, m):
    return ((n + m - 1) // m) * m


def _cdiv(a, b):
    return (a + b - 1) // b


def _selective_kernel(x_ref, g_ref, lnw_ref, lnb_ref, w1_ref, b1_ref, w2d_ref,
                      sel_ref, *, eps, approx_gelu):
    # ---- LayerNorm over the channel dim; upcast to f32 in-register only ----
    x = x_ref[...].astype(jnp.float32)                          # (TM, C)
    mean = jnp.mean(x, axis=-1, keepdims=True)
    xc = x - mean
    var = jnp.mean(xc * xc, axis=-1, keepdims=True)
    xn = xc * jax.lax.rsqrt(var + eps)
    xn = xn * lnw_ref[...] + lnb_ref[...]

    # ---- fc1 on the MXU: bf16 operands, f32 accumulation ----
    h = jnp.dot(xn.astype(jnp.bfloat16), w1_ref[...],
                preferred_element_type=jnp.float32)             # (TM, Hp)
    # tanh-GELU lowers to the EUP (a separate, otherwise idle VLIW slot); the exact-erf
    # form is a long VALU polynomial.  Only near-zero-margin tokens can differ.
    h = jax.nn.gelu(h + b1_ref[...], approximate=approx_gelu)
    # (dropout p=0 is a no-op)

    # ---- fc2 collapsed to a class-0/class-1 logit difference, produced lane-dense ----
    # d_row[0, t] = sum_k h[t, k] * (w2[k,0]-w2[k,1]); the (b2[0]-b2[1]) term and the
    # gumbel difference (g0-g1) are pre-folded into g_ref in the wrapper.  lhs=(1,Hp)
    # streams against h contracted on its minor (lane) dim, so the result lands
    # directly in the (1, TM) lane-dense orientation of the output block -- no
    # (TM,1)->(1,TM) relayout and no VMEM transpose of the h tile is requested here.
    # Only the sign of d+g is consumed, so bf16 operands are free precision-wise.
    d_row = jax.lax.dot_general(
        w2d_ref[...], h.astype(jnp.bfloat16),
        dimension_numbers=(((1,), (1,)), ((), ())),
        preferred_element_type=jnp.float32)                     # (1, TM)

    y = d_row + g_ref[...]                                      # (1, TM)
    # ">=" matches argmax tie-breaking to index 0 (class 0 wins ties).
    sel_ref[...] = jnp.where(y >= 0.0, jnp.float32(1.0), jnp.float32(0.0))


def _choose_tiling(N, C, Hp, x_itemsize, requested=None):
    """Generation-aware (tile_m, vmem_limit_bytes, n_tiles)."""
    try:
        phys_vmem = int(getattr(pltpu.get_tpu_info(), "vmem_capacity_bytes",
                                128 * 2 ** 20))
    except Exception:
        phys_vmem = 128 * 2 ** 20
    # Scoped limit ~3/4 of physical VMEM: v5e/v6e (128 MiB) -> ~96 MiB; v7x (64 MiB) -> 48 MiB.
    vmem_limit = max(16 * 2 ** 20, min(phys_vmem * 3 // 4, 100 * 2 ** 20))

    # Per-token-row VMEM: double-buffered x tile + f32 LN temps + f32/bf16 hidden row
    # + lane-dense gumbel/selector rows.  Weights counted twice in case single
    # buffering of the grid-invariant operands is unavailable on this jax.
    per_row = 2 * C * x_itemsize + 3 * C * 4 + Hp * 4 + Hp * 2 + 8 * 4
    fixed = C * Hp * 2 + 2 * C * 4 + 2 * Hp * 4 + Hp * 2
    budget = int(0.8 * vmem_limit) - 2 * fixed

    if requested is None:
        tile_m = budget // per_row if budget > per_row else 128
        tile_m = max(128, min(1024, (tile_m // 128) * 128))
    else:
        tile_m = max(8, int(requested))
        if tile_m >= 128:
            tile_m = (tile_m // 128) * 128

    # Never exceed the (padded) token count; keep a multiple of 128 when N allows so
    # the lane-dense selector stores stay unmasked.
    cap = _round_up(N, 8) if N < 128 else _round_up(N, 128)
    tile_m = min(tile_m, cap)

    # v7x heuristic (<= 64 MiB VMEM per TensorCore, 2 TCs): keep >= ~4 tiles so the
    # "parallel" grid axis can actually be split across both cores.  One extra grid
    # step costs ~0.35 us elsewhere -- negligible.
    if phys_vmem <= 64 * 2 ** 20 and N >= 512:
        tile_m = min(tile_m, max(256, _round_up(_cdiv(N, 4), 128)))

    n_tiles = _cdiv(N, tile_m)
    return tile_m, vmem_limit, n_tiles


def selective_module_forward(x, gumbel_noise, params, *, tau=1.0, tile_m=None,
                             approx_gelu=True, interpret=False):
    """SelectiveModule forward, version=0, inference=False (training path).

    x: (B, L, C) tokens, ideally bf16 (the kernel streams x in its input dtype and
    upcasts to f32 in-register -- bf16 halves the binding HBM stream).
    Returns (selector: bool (B, L), diff_selector: f32 (B, L, 1))."""
    assert tau > 0.0, "gumbel-softmax temperature must be positive (monotone rescale)"
    B, L, C = x.shape
    N = B * L
    H = params["w1"].shape[1]
    Hp = _round_up(max(H, 128), 128)      # lane-pad hidden dim; zero columns are inert

    # Token matrix stays in its input dtype and layout — no extra HBM pad/cast pass.
    x2d = x.reshape(N, C)

    lnw = params["ln_w"].reshape(1, C).astype(jnp.float32)
    lnb = params["ln_b"].reshape(1, C).astype(jnp.float32)

    w1 = params["w1"].astype(jnp.bfloat16)                      # (C, H)
    b1 = params["b1"].astype(jnp.float32)                       # (H,)
    w2 = params["w2"].astype(jnp.float32)                       # (H, 2)
    b2 = params["b2"].astype(jnp.float32)                       # (2,)
    if Hp != H:
        w1 = jnp.pad(w1, ((0, 0), (0, Hp - H)))
        b1 = jnp.pad(b1, ((0, Hp - H),))
        w2 = jnp.pad(w2, ((0, Hp - H), (0, 0)))
    b1 = b1.reshape(1, Hp)
    w2d = (w2[:, 0] - w2[:, 1]).reshape(1, Hp).astype(jnp.bfloat16)  # class0 - class1
    b2d = b2[0] - b2[1]

    tile_m, vmem_limit, n_tiles = _choose_tiling(N, C, Hp, x.dtype.itemsize, tile_m)

    # Lane-dense per-token gumbel difference with the fc2 bias difference folded in.
    g = gumbel_noise.reshape(N, 2).astype(jnp.float32)
    g_diff = (g[:, 0] - g[:, 1]) + b2d                          # (N,)
    g_rows = jnp.pad(g_diff, ((0, n_tiles * tile_m - N),)).reshape(n_tiles, 1, tile_m)

    kernel = partial(_selective_kernel, eps=1e-5, approx_gelu=approx_gelu)

    def build(single_buffer_weights):
        # Grid-invariant operands (constant index_map) do not need Pallas' default
        # double buffer; single-buffering frees a full fc1-weight copy of VMEM.
        const_kw = ({"pipeline_mode": pl.Buffered(1)} if single_buffer_weights else {})
        return pl.pallas_call(
            kernel,
            out_shape=jax.ShapeDtypeStruct((n_tiles, 1, tile_m), jnp.float32),
            grid_spec=pltpu.PrefetchScalarGridSpec(
                num_scalar_prefetch=0,
                grid=(n_tiles,),
                in_specs=[
                    pl.BlockSpec((tile_m, C), lambda i: (i, 0)),            # x row-tile
                    pl.BlockSpec((None, 1, tile_m), lambda i: (i, 0, 0)),   # gumbel diff (lane-dense)
                    pl.BlockSpec((1, C), lambda i: (0, 0), **const_kw),     # LN weight
                    pl.BlockSpec((1, C), lambda i: (0, 0), **const_kw),     # LN bias
                    pl.BlockSpec((C, Hp), lambda i: (0, 0), **const_kw),    # fc1 weight (bf16)
                    pl.BlockSpec((1, Hp), lambda i: (0, 0), **const_kw),    # fc1 bias
                    pl.BlockSpec((1, Hp), lambda i: (0, 0), **const_kw),    # fc2 weight diff (bf16)
                ],
                out_specs=pl.BlockSpec((None, 1, tile_m), lambda i: (i, 0, 0)),
            ),
            compiler_params=pltpu.CompilerParams(
                dimension_semantics=("parallel",),
                vmem_limit_bytes=vmem_limit),
            interpret=interpret,
        )

    try:
        sel_rows = build(True)(x2d, g_rows, lnw, lnb, w1, b1, w2d)
    except Exception:
        # pipeline_mode=pl.Buffered(1) not accepted by this jax build — fall back to
        # the default double-buffered (still correct, slightly more VMEM).
        sel_rows = build(False)(x2d, g_rows, lnw, lnb, w1, b1, w2d)

    sel_flat = sel_rows.reshape(-1)[:N]
    diff_selector = sel_flat.reshape(B, L, 1)                   # hard 0/1 forward values
    selector = sel_flat.reshape(B, L).astype(bool)              # version=0: .bool().squeeze(2)
    # TODO(synk): the straight-through gradient ((hard - soft).detach() + soft), the
    # inference argmin path and the version=1 CLS-token concat are backward/branch
    # constructs not reproduced here; only the training-path forward values are.
    return selector, diff_selector


def _reference_forward(x, gumbel_noise, params, *, tau=1.0, eps=1e-5):
    """Pure-JAX f32 reference of the PyTorch forward (training path, exact-erf GELU)."""
    xf = x.astype(jnp.float32)
    mean = jnp.mean(xf, axis=-1, keepdims=True)
    var = jnp.mean(jnp.square(xf - mean), axis=-1, keepdims=True)
    xn = (xf - mean) * jax.lax.rsqrt(var + eps) * params["ln_w"] + params["ln_b"]
    h = jax.nn.gelu(xn @ params["w1"] + params["b1"], approximate=False)
    logits = h @ params["w2"] + params["b2"]
    scale = jax.nn.log_softmax(logits, axis=-1)
    y = (scale + gumbel_noise) / tau
    hard0 = (y[..., 0] >= y[..., 1]).astype(jnp.float32)        # class-0 slot of hard one-hot
    margin = (logits[..., 0] - logits[..., 1]) + (gumbel_noise[..., 0] - gumbel_noise[..., 1])
    return hard0.astype(bool), hard0[..., None], margin


def init_params(key, channels, hidden_channels):
    k1, k2, k3, k4 = jax.random.split(key, 4)
    return {
        "ln_w": jnp.ones((channels,), jnp.float32),
        "ln_b": jnp.zeros((channels,), jnp.float32),
        # Linear weights stored as (in, out); values deterministic from the key.
        "w1": jax.random.normal(k1, (channels, hidden_channels), jnp.float32)
              * (1.0 / math.sqrt(channels)),
        "b1": jax.random.normal(k2, (hidden_channels,), jnp.float32) * 0.01,
        "w2": jax.random.normal(k3, (hidden_channels, 2), jnp.float32)
              * (1.0 / math.sqrt(hidden_channels)),
        "b2": jax.random.normal(k4, (2,), jnp.float32) * 0.01,
    }


if __name__ == "__main__":
    B, L, C, H = 2, 8, 32, 32
    tau = 1.0

    root = jax.random.PRNGKey(0)
    kx, kg, kp = jax.random.split(root, 3)

    # bf16 activations: halves the binding x HBM stream; LN stats are still f32
    # in-register inside the kernel.
    x = jax.random.normal(kx, (B, L, C), jnp.bfloat16)
    gumbel_noise = jax.random.gumbel(kg, (B, L, 2), jnp.float32)
    params = init_params(kp, C, H)

    selector, diff_selector = selective_module_forward(x, gumbel_noise, params, tau=tau)
    jax.block_until_ready((selector, diff_selector))

    assert selector.shape == (B, L) and selector.dtype == jnp.bool_
    assert diff_selector.shape == (B, L, 1) and diff_selector.dtype == jnp.float32

    ref_sel, ref_diff, margin = _reference_forward(x, gumbel_noise, params, tau=tau)
    # bf16 MXU operands / tanh-GELU can flip only near-threshold tokens; require
    # agreement wherever the decision margin is comfortably away from zero.
    decided = jnp.abs(margin) > 0.1
    assert bool(jnp.all(jnp.where(decided, selector == ref_sel, True)))
    assert bool(jnp.all(diff_selector == selector[..., None].astype(jnp.float32)))

    print("KERNEL_OK")
</pallas_src>

<mosaic_0001>
module attributes {stable_mosaic.version = 11 : i64} {
  func.func @_selective_kernel(%arg0: i32, %arg1: memref<16x32xbf16, #tpu.memory_space<vmem>>, %arg2: memref<1x1x16xf32, #tpu.memory_space<vmem>>, %arg3: memref<1x32xf32, #tpu.memory_space<vmem>>, %arg4: memref<1x32xf32, #tpu.memory_space<vmem>>, %arg5: memref<32x128xbf16, #tpu.memory_space<vmem>>, %arg6: memref<1x128xf32, #tpu.memory_space<vmem>>, %arg7: memref<1x128xbf16, #tpu.memory_space<vmem>>, %arg8: memref<1x1x16xf32, #tpu.memory_space<vmem>>) attributes {dimension_semantics = [#tpu.dimension_semantics<parallel>], iteration_bounds = array<i64: 1>, scalar_prefetch = 0 : i64, scratch_operands = 0 : i64, tpu.core_type = #tpu.core_type<tc>, window_params = [{transform_indices = @transform_0, window_bounds = array<i64: 16, 32>}, {transform_indices = @transform_1, window_bounds = array<i64: 1, 1, 16>}, {pipeline_mode = #tpu.pipeline_mode<synchronous>, transform_indices = @transform_2, window_bounds = array<i64: 1, 32>}, {pipeline_mode = #tpu.pipeline_mode<synchronous>, transform_indices = @transform_3, window_bounds = array<i64: 1, 32>}, {pipeline_mode = #tpu.pipeline_mode<synchronous>, transform_indices = @transform_4, window_bounds = array<i64: 32, 128>}, {pipeline_mode = #tpu.pipeline_mode<synchronous>, transform_indices = @transform_5, window_bounds = array<i64: 1, 128>}, {pipeline_mode = #tpu.pipeline_mode<synchronous>, transform_indices = @transform_6, window_bounds = array<i64: 1, 128>}, {transform_indices = @transform_7, window_bounds = array<i64: 1, 1, 16>}]} {
    %c0 = arith.constant 0 : index
    %c0_0 = arith.constant 0 : index
    %0 = vector.load %arg1[%c0, %c0_0] : memref<16x32xbf16, #tpu.memory_space<vmem>>, vector<16x32xbf16>
    %1 = arith.extf %0 : vector<16x32xbf16> to vector<16x32xf32>
    %cst = arith.constant dense<0.000000e+00> : vector<16xf32>
    %2 = vector.multi_reduction <add>, %1, %cst [1] : vector<16x32xf32> to vector<16xf32>
    %3 = vector.shape_cast %2 : vector<16xf32> to vector<16x1xf32>
    %cst_1 = arith.constant 3.200000e+01 : f32
    %4 = vector.broadcast %cst_1 : f32 to vector<16x1xf32>
    %5 = arith.divf %3, %4 : vector<16x1xf32>
    %6 = vector.broadcast %5 : vector<16x1xf32> to vector<16x32xf32>
    %7 = arith.subf %1, %6 : vector<16x32xf32>
    %8 = arith.mulf %7, %7 : vector<16x32xf32>
    %cst_2 = arith.constant dense<0.000000e+00> : vector<16xf32>
    %9 = vector.multi_reduction <add>, %8, %cst_2 [1] : vector<16x32xf32> to vector<16xf32>
    %10 = vector.shape_cast %9 : vector<16xf32> to vector<16x1xf32>
    %cst_3 = arith.constant 3.200000e+01 : f32
    %11 = vector.broadcast %cst_3 : f32 to vector<16x1xf32>
    %12 = arith.divf %10, %11 : vector<16x1xf32>
    %cst_4 = arith.constant 9.99999974E-6 : f32
    %13 = vector.broadcast %cst_4 : f32 to vector<16x1xf32>
    %14 = arith.addf %12, %13 : vector<16x1xf32>
    %15 = math.rsqrt %14 : vector<16x1xf32>
    %16 = vector.broadcast %15 : vector<16x1xf32> to vector<16x32xf32>
    %17 = arith.mulf %7, %16 : vector<16x32xf32>
    %c0_5 = arith.constant 0 : index
    %c0_6 = arith.constant 0 : index
    %18 = vector.load %arg3[%c0_5, %c0_6] : memref<1x32xf32, #tpu.memory_space<vmem>>, vector<1x32xf32>
    %19 = vector.broadcast %18 : vector<1x32xf32> to vector<16x32xf32>
    %20 = arith.mulf %17, %19 : vector<16x32xf32>
    %c0_7 = arith.constant 0 : index
    %c0_8 = arith.constant 0 : index
    %21 = vector.load %arg4[%c0_7, %c0_8] : memref<1x32xf32, #tpu.memory_space<vmem>>, vector<1x32xf32>
    %22 = vector.broadcast %21 : vector<1x32xf32> to vector<16x32xf32>
    %23 = arith.addf %20, %22 : vector<16x32xf32>
    %24 = arith.truncf %23 : vector<16x32xf32> to vector<16x32xbf16>
    %c0_9 = arith.constant 0 : index
    %c0_10 = arith.constant 0 : index
    %25 = vector.load %arg5[%c0_9, %c0_10] : memref<32x128xbf16, #tpu.memory_space<vmem>>, vector<32x128xbf16>
    %cst_11 = arith.constant dense<0.000000e+00> : vector<16x128xf32>
    %26 = tpu.matmul %24, %25, %cst_11 {dimension_numbers = #tpu.dot_dimension_numbers<[1], [0], [0], [1], [0, 0, 1, 1], [], []>} : vector<16x32xbf16>, vector<32x128xbf16>, vector<16x128xf32> -> vector<16x128xf32>
    %c0_12 = arith.constant 0 : index
    %c0_13 = arith.constant 0 : index
    %27 = vector.load %arg6[%c0_12, %c0_13] : memref<1x128xf32, #tpu.memory_space<vmem>>, vector<1x128xf32>
    %28 = vector.broadcast %27 : vector<1x128xf32> to vector<16x128xf32>
    %29 = arith.addf %26, %28 : vector<16x128xf32>
    %30 = arith.mulf %29, %29 : vector<16x128xf32>
    %31 = arith.mulf %29, %30 : vector<16x128xf32>
    %cst_14 = arith.constant 4.471500e-02 : f32
    %32 = vector.broadcast %cst_14 : f32 to vector<16x128xf32>
    %33 = arith.mulf %32, %31 : vector<16x128xf32>
    %34 = arith.addf %29, %33 : vector<16x128xf32>
    %cst_15 = arith.constant 0.797884583 : f32
    %35 = vector.broadcast %cst_15 : f32 to vector<16x128xf32>
    %36 = arith.mulf %35, %34 : vector<16x128xf32>
    %37 = math.tanh %36 : vector<16x128xf32>
    %cst_16 = arith.constant 1.000000e+00 : f32
    %38 = vector.broadcast %cst_16 : f32 to vector<16x128xf32>
    %39 = arith.addf %38, %37 : vector<16x128xf32>
    %cst_17 = arith.constant 5.000000e-01 : f32
    %40 = vector.broadcast %cst_17 : f32 to vector<16x128xf32>
    %41 = arith.mulf %40, %39 : vector<16x128xf32>
    %42 = arith.mulf %29, %41 : vector<16x128xf32>
    %c0_18 = arith.constant 0 : index
    %c0_19 = arith.constant 0 : index
    %43 = vector.load %arg7[%c0_18, %c0_19] : memref<1x128xbf16, #tpu.memory_space<vmem>>, vector<1x128xbf16>
    %44 = arith.truncf %42 : vector<16x128xf32> to vector<16x128xbf16>
    %cst_20 = arith.constant dense<0.000000e+00> : vector<1x16xf32>
    %45 = tpu.matmul %43, %44, %cst_20 {dimension_numbers = #tpu.dot_dimension_numbers<[1], [1], [0], [0], [0, 0, 1, 0], [], []>} : vector<1x128xbf16>, vector<16x128xbf16>, vector<1x16xf32> -> vector<1x16xf32>
    %c0_21 = arith.constant 0 : index
    %c0_22 = arith.constant 0 : index
    %c0_23 = arith.constant 0 : index
    %46 = vector.load %arg2[%c0_21, %c0_22, %c0_23] : memref<1x1x16xf32, #tpu.memory_space<vmem>>, vector<1x1x16xf32>
    %47 = vector.shape_cast %46 : vector<1x1x16xf32> to vector<1x16xf32>
    %48 = arith.addf %45, %47 : vector<1x16xf32>
    %cst_24 = arith.constant 0.000000e+00 : f32
    %49 = vector.broadcast %cst_24 : f32 to vector<1x16xf32>
    %50 = arith.cmpf oge, %48, %49 : vector<1x16xf32>
    %cst_25 = arith.constant 1.000000e+00 : f32
    %cst_26 = arith.constant 0.000000e+00 : f32
    %51 = vector.broadcast %cst_25 : f32 to vector<1x16xf32>
    %52 = vector.broadcast %cst_26 : f32 to vector<1x16xf32>
    %53 = arith.select %50, %51, %52 : vector<1x16xi1>, vector<1x16xf32>
    %c0_27 = arith.constant 0 : index
    %c0_28 = arith.constant 0 : index
    %c0_29 = arith.constant 0 : index
    %54 = vector.load %arg8[%c0_27, %c0_28, %c0_29] : memref<1x1x16xf32, #tpu.memory_space<vmem>>, vector<1x1x16xf32>
    %55 = vector.shape_cast %54 : vector<1x1x16xf32> to vector<1x16xf32>
    %56 = vector.shape_cast %53 : vector<1x16xf32> to vector<1x1x16xf32>
    tpu.vector_store %arg8[%c0_27, %c0_28, %c0_29], %56 {strides = array<i32>} : memref<1x1x16xf32, #tpu.memory_space<vmem>>, vector<1x1x16xf32>,
    return
  }
  func.func @transform_0(%arg0: i32) -> (i32, i32) {
    %c0_i32 = arith.constant 0 : i32
    %c0_i32_0 = arith.constant 0 : i32
    return %arg0, %c0_i32 : i32, i32
  }
  func.func @transform_1(%arg0: i32) -> (i32, i32, i32) {
    %c0_i32 = arith.constant 0 : i32
    %c0_i32_0 = arith.constant 0 : i32
    %c0_i32_1 = arith.constant 0 : i32
    return %arg0, %c0_i32, %c0_i32_0 : i32, i32, i32
  }
  func.func @transform_2(%arg0: i32) -> (i32, i32) {
    %c0_i32 = arith.constant 0 : i32
    %c0_i32_0 = arith.constant 0 : i32
    %c0_i32_1 = arith.constant 0 : i32
    return %c0_i32, %c0_i32_0 : i32, i32
  }
  func.func @transform_3(%arg0: i32) -> (i32, i32) {
    %c0_i32 = arith.constant 0 : i32
    %c0_i32_0 = arith.constant 0 : i32
    %c0_i32_1 = arith.constant 0 : i32
    return %c0_i32, %c0_i32_0 : i32, i32
  }
  func.func @transform_4(%arg0: i32) -> (i32, i32) {
    %c0_i32 = arith.constant 0 : i32
    %c0_i32_0 = arith.constant 0 : i32
    %c0_i32_1 = arith.constant 0 : i32
    return %c0_i32, %c0_i32_0 : i32, i32
  }
  func.func @transform_5(%arg0: i32) -> (i32, i32) {
    %c0_i32 = arith.constant 0 : i32
    %c0_i32_0 = arith.constant 0 : i32
    %c0_i32_1 = arith.constant 0 : i32
    return %c0_i32, %c0_i32_0 : i32, i32
  }
  func.func @transform_6(%arg0: i32) -> (i32, i32) {
    %c0_i32 = arith.constant 0 : i32
    %c0_i32_0 = arith.constant 0 : i32
    %c0_i32_1 = arith.constant 0 : i32
    return %c0_i32, %c0_i32_0 : i32, i32
  }
  func.func @transform_7(%arg0: i32) -> (i32, i32, i32) {
    %c0_i32 = arith.constant 0 : i32
    %c0_i32_0 = arith.constant 0 : i32
    %c0_i32_1 = arith.constant 0 : i32
    return %arg0, %c0_i32, %c0_i32_0 : i32, i32, i32
  }
}

module attributes {stable_mosaic.version = 11 : i64} {
  func.func @_selective_kernel(%arg0: i32, %arg1: memref<16x32xbf16, #tpu.memory_space<vmem>>, %arg2: memref<1x1x16xf32, #tpu.memory_space<vmem>>, %arg3: memref<1x32xf32, #tpu.memory_space<vmem>>, %arg4: memref<1x32xf32, #tpu.memory_space<vmem>>, %arg5: memref<32x128xbf16, #tpu.memory_space<vmem>>, %arg6: memref<1x128xf32, #tpu.memory_space<vmem>>, %arg7: memref<1x128xbf16, #tpu.memory_space<vmem>>, %arg8: memref<1x1x16xf32, #tpu.memory_space<vmem>>) attributes {dimension_semantics = [#tpu.dimension_semantics<parallel>], iteration_bounds = array<i64: 1>, scalar_prefetch = 0 : i64, scratch_operands = 0 : i64, tpu.core_type = #tpu.core_type<tc>, window_params = [{transform_indices = @transform_0, window_bounds = array<i64: 16, 32>}, {transform_indices = @transform_1, window_bounds = array<i64: 1, 1, 16>}, {pipeline_mode = #tpu.pipeline_mode<synchronous>, transform_indices = @transform_2, window_bounds = array<i64: 1, 32>}, {pipeline_mode = #tpu.pipeline_mode<synchronous>, transform_indices = @transform_3, window_bounds = array<i64: 1, 32>}, {pipeline_mode = #tpu.pipeline_mode<synchronous>, transform_indices = @transform_4, window_bounds = array<i64: 32, 128>}, {pipeline_mode = #tpu.pipeline_mode<synchronous>, transform_indices = @transform_5, window_bounds = array<i64: 1, 128>}, {pipeline_mode = #tpu.pipeline_mode<synchronous>, transform_indices = @transform_6, window_bounds = array<i64: 1, 128>}, {transform_indices = @transform_7, window_bounds = array<i64: 1, 1, 16>}]} {
    %c0 = arith.constant 0 : index
    %c0_0 = arith.constant 0 : index
    %0 = vector.load %arg1[%c0, %c0_0] : memref<16x32xbf16, #tpu.memory_space<vmem>>, vector<16x32xbf16>
    %1 = arith.extf %0 : vector<16x32xbf16> to vector<16x32xf32>
    %cst = arith.constant dense<0.000000e+00> : vector<16xf32>
    %2 = vector.multi_reduction <add>, %1, %cst [1] : vector<16x32xf32> to vector<16xf32>
    %3 = vector.shape_cast %2 : vector<16xf32> to vector<16x1xf32>
    %cst_1 = arith.constant 3.200000e+01 : f32
    %4 = vector.broadcast %cst_1 : f32 to vector<16x1xf32>
    %5 = arith.divf %3, %4 : vector<16x1xf32>
    %6 = vector.broadcast %5 : vector<16x1xf32> to vector<16x32xf32>
    %7 = arith.subf %1, %6 : vector<16x32xf32>
    %8 = arith.mulf %7, %7 : vector<16x32xf32>
    %cst_2 = arith.constant dense<0.000000e+00> : vector<16xf32>
    %9 = vector.multi_reduction <add>, %8, %cst_2 [1] : vector<16x32xf32> to vector<16xf32>
    %10 = vector.shape_cast %9 : vector<16xf32> to vector<16x1xf32>
    %cst_3 = arith.constant 3.200000e+01 : f32
    %11 = vector.broadcast %cst_3 : f32 to vector<16x1xf32>
    %12 = arith.divf %10, %11 : vector<16x1xf32>
    %cst_4 = arith.constant 9.99999974E-6 : f32
    %13 = vector.broadcast %cst_4 : f32 to vector<16x1xf32>
    %14 = arith.addf %12, %13 : vector<16x1xf32>
    %15 = math.rsqrt %14 : vector<16x1xf32>
    %16 = vector.broadcast %15 : vector<16x1xf32> to vector<16x32xf32>
    %17 = arith.mulf %7, %16 : vector<16x32xf32>
    %c0_5 = arith.constant 0 : index
    %c0_6 = arith.constant 0 : index
    %18 = vector.load %arg3[%c0_5, %c0_6] : memref<1x32xf32, #tpu.memory_space<vmem>>, vector<1x32xf32>
    %19 = vector.broadcast %18 : vector<1x32xf32> to vector<16x32xf32>
    %20 = arith.mulf %17, %19 : vector<16x32xf32>
    %c0_7 = arith.constant 0 : index
    %c0_8 = arith.constant 0 : index
    %21 = vector.load %arg4[%c0_7, %c0_8] : memref<1x32xf32, #tpu.memory_space<vmem>>, vector<1x32xf32>
    %22 = vector.broadcast %21 : vector<1x32xf32> to vector<16x32xf32>
    %23 = arith.addf %20, %22 : vector<16x32xf32>
    %24 = arith.truncf %23 : vector<16x32xf32> to vector<16x32xbf16>
    %c0_9 = arith.constant 0 : index
    %c0_10 = arith.constant 0 : index
    %25 = vector.load %arg5[%c0_9, %c0_10] : memref<32x128xbf16, #tpu.memory_space<vmem>>, vector<32x128xbf16>
    %cst_11 = arith.constant dense<0.000000e+00> : vector<16x128xf32>
    %26 = tpu.matmul %24, %25, %cst_11 {dimension_numbers = #tpu.dot_dimension_numbers<[1], [0], [0], [1], [0, 0, 1, 1], [], []>} : vector<16x32xbf16>, vector<32x128xbf16>, vector<16x128xf32> -> vector<16x128xf32>
    %c0_12 = arith.constant 0 : index
    %c0_13 = arith.constant 0 : index
    %27 = vector.load %arg6[%c0_12, %c0_13] : memref<1x128xf32, #tpu.memory_space<vmem>>, vector<1x128xf32>
    %28 = vector.broadcast %27 : vector<1x128xf32> to vector<16x128xf32>
    %29 = arith.addf %26, %28 : vector<16x128xf32>
    %30 = arith.mulf %29, %29 : vector<16x128xf32>
    %31 = arith.mulf %29, %30 : vector<16x128xf32>
    %cst_14 = arith.constant 4.471500e-02 : f32
    %32 = vector.broadcast %cst_14 : f32 to vector<16x128xf32>
    %33 = arith.mulf %32, %31 : vector<16x128xf32>
    %34 = arith.addf %29, %33 : vector<16x128xf32>
    %cst_15 = arith.constant 0.797884583 : f32
    %35 = vector.broadcast %cst_15 : f32 to vector<16x128xf32>
    %36 = arith.mulf %35, %34 : vector<16x128xf32>
    %37 = math.tanh %36 : vector<16x128xf32>
    %cst_16 = arith.constant 1.000000e+00 : f32
    %38 = vector.broadcast %cst_16 : f32 to vector<16x128xf32>
    %39 = arith.addf %38, %37 : vector<16x128xf32>
    %cst_17 = arith.constant 5.000000e-01 : f32
    %40 = vector.broadcast %cst_17 : f32 to vector<16x128xf32>
    %41 = arith.mulf %40, %39 : vector<16x128xf32>
    %42 = arith.mulf %29, %41 : vector<16x128xf32>
    %c0_18 = arith.constant 0 : index
    %c0_19 = arith.constant 0 : index
    %43 = vector.load %arg7[%c0_18, %c0_19] : memref<1x128xbf16, #tpu.memory_space<vmem>>, vector<1x128xbf16>
    %44 = arith.truncf %42 : vector<16x128xf32> to vector<16x128xbf16>
    %cst_20 = arith.constant dense<0.000000e+00> : vector<1x16xf32>
    %45 = tpu.matmul %43, %44, %cst_20 {dimension_numbers = #tpu.dot_dimension_numbers<[1], [1], [0], [0], [0, 0, 1, 0], [], []>} : vector<1x128xbf16>, vector<16x128xbf16>, vector<1x16xf32> -> vector<1x16xf32>
    %c0_21 = arith.constant 0 : index
    %c0_22 = arith.constant 0 : index
    %c0_23 = arith.constant 0 : index
    %46 = vector.load %arg2[%c0_21, %c0_22, %c0_23] : memref<1x1x16xf32, #tpu.memory_space<vmem>>, vector<1x1x16xf32>
    %47 = vector.shape_cast %46 : vector<1x1x16xf32> to vector<1x16xf32>
    %48 = arith.addf %45, %47 : vector<1x16xf32>
    %cst_24 = arith.constant 0.000000e+00 : f32
    %49 = vector.broadcast %cst_24 : f32 to vector<1x16xf32>
    %50 = arith.cmpf oge, %48, %49 : vector<1x16xf32>
    %cst_25 = arith.constant 1.000000e+00 : f32
    %cst_26 = arith.constant 0.000000e+00 : f32
    %51 = vector.broadcast %cst_25 : f32 to vector<1x16xf32>
    %52 = vector.broadcast %cst_26 : f32 to vector<1x16xf32>
    %53 = arith.select %50, %51, %52 : vector<1x16xi1>, vector<1x16xf32>
    %c0_27 = arith.constant 0 : index
    %c0_28 = arith.constant 0 : index
    %c0_29 = arith.constant 0 : index
    %54 = vector.load %arg8[%c0_27, %c0_28, %c0_29] : memref<1x1x16xf32, #tpu.memory_space<vmem>>, vector<1x1x16xf32>
    %55 = vector.shape_cast %54 : vector<1x1x16xf32> to vector<1x16xf32>
    %56 = vector.shape_cast %53 : vector<1x16xf32> to vector<1x1x16xf32>
    tpu.vector_store %arg8[%c0_27, %c0_28, %c0_29], %56 {strides = array<i32>} : memref<1x1x16xf32, #tpu.memory_space<vmem>>, vector<1x1x16xf32>,
    return
  }
  func.func @transform_0(%arg0: i32) -> (i32, i32) {
    %c0_i32 = arith.constant 0 : i32
    %c0_i32_0 = arith.constant 0 : i32
    return %arg0, %c0_i32 : i32, i32
  }
  func.func @transform_1(%arg0: i32) -> (i32, i32, i32) {
    %c0_i32 = arith.constant 0 : i32
    %c0_i32_0 = arith.constant 0 : i32
    %c0_i32_1 = arith.constant 0 : i32
    return %arg0, %c0_i32, %c0_i32_0 : i32, i32, i32
  }
  func.func @transform_2(%arg0: i32) -> (i32, i32) {
    %c0_i32 = arith.constant 0 : i32
    %c0_i32_0 = arith.constant 0 : i32
    %c0_i32_1 = arith.constant 0 : i32
    return %c0_i32, %c0_i32_0 : i32, i32
  }
  func.func @transform_3(%arg0: i32) -> (i32, i32) {
    %c0_i32 = arith.constant 0 : i32
    %c0_i32_0 = arith.constant 0 : i32
    %c0_i32_1 = arith.constant 0 : i32
    return %c0_i32, %c0_i32_0 : i32, i32
  }
  func.func @transform_4(%arg0: i32) -> (i32, i32) {
    %c0_i32 = arith.constant 0 : i32
    %c0_i32_0 = arith.constant 0 : i32
    %c0_i32_1 = arith.constant 0 : i32
    return %c0_i32, %c0_i32_0 : i32, i32
  }
  func.func @transform_5(%arg0: i32) -> (i32, i32) {
    %c0_i32 = arith.constant 0 : i32
    %c0_i32_0 = arith.constant 0 : i32
    %c0_i32_1 = arith.constant 0 : i32
    return %c0_i32, %c0_i32_0 : i32, i32
  }
  func.func @transform_6(%arg0: i32) -> (i32, i32) {
    %c0_i32 = arith.constant 0 : i32
    %c0_i32_0 = arith.constant 0 : i32
    %c0_i32_1 = arith.constant 0 : i32
    return %c0_i32, %c0_i32_0 : i32, i32
  }
  func.func @transform_7(%arg0: i32) -> (i32, i32, i32) {
    %c0_i32 = arith.constant 0 : i32
    %c0_i32_0 = arith.constant 0 : i32
    %c0_i32_1 = arith.constant 0 : i32
    return %arg0, %c0_i32, %c0_i32_0 : i32, i32, i32
  }
}

</mosaic_0001>

<bundles_post_ra>
// kernel: tpu_custom_call.1
= control target key start
LH: loop header
LB: loop body
LE: loop exit
PB: predicated region body
PF: predicated region fallthrough
CT: control target
= control target key end

     0   :  { %12 = vsyncpa [#allocation3], 0  ;;  %s450_s0 = inlined_call_operand.hbm [shape: bf16[16,32], index: 0, kind: input, shape index: {}]   ;;  %s451_s1 = inlined_call_operand.hbm [shape: f32[1,1,16], index: 1, kind: input, shape index: {}]   ;;  %s452_s2 = inlined_call_operand.vmem [shape: f32[1,32], index: 2, kind: input, shape index: {}]   ;;  %s453_s3 = inlined_call_operand.vmem [shape: f32[1,32], index: 3, kind: input, shape index: {}]   ;;  %s454_s4 = inlined_call_operand.hbm [shape: bf16[32,128], index: 4, kind: input, shape index: {}]   ;;  %s455_s5 = inlined_call_operand.vmem [shape: f32[1,128], index: 5, kind: input, shape index: {}]   ;;  %s456_s6 = inlined_call_operand.vmem [shape: bf16[1,128], index: 6, kind: input, shape index: {}]   ;;  %s457_s7 = inlined_call_operand.hbm [shape: f32[1,1,16], index: 7, kind: output, shape index: {}]  }
   0x1   :  { %13 = vsyncpa [#allocation6], 0  ;;  %s33_s26 = sshll.u32 %s451_s1, 4  ;;  %s34_s26 = int_to_ptr.hbm [resolvable:$true] %s33_s26 }
   0x2   :  { %14 = vsyncpa [#allocation4], 0  ;;  %s373_s27 = smov [#allocation5]   ;;  %s19_s8 = sshll.u32 %s450_s0, 4  ;;  %s20_s8 = int_to_ptr.hbm [resolvable:$true] %s19_s8 }
   0x3   :  { %s35_s28 = sshll.u32 %s373_s27, 4  ;;  %s374_s9 = smov [#allocation2]   ;;  %s36_s28 = int_to_ptr.vmem [resolvable:$true] %s35_s28 }
   0x4   :  { %38 = dma.hbm_to_vmem [thread:$0]  %s34_s26, 16, %s36_s28, [#allocation6]  }
   0x5   :  { %s21_s10 = sshll.u32 %s374_s9, 4  ;;  %s375_s11 = smov 64   ;;  %s22_s10 = int_to_ptr.vmem [resolvable:$true] %s21_s10 }
   0x6   :  { %s376_s12 = smov 4   ;;  %s47_s1 = sshll.u32 %s454_s4, 4  ;;  %s48_s1 = int_to_ptr.hbm [resolvable:$true] %s47_s1 }
   0x7   :  { %27 = dma.hbm_to_vmem [thread:$0]  %s20_s8, 128, %s22_s10, [#allocation3], %s375_s11, %s375_s11, %s376_s12  }
   0x8   :  { %s377_s15 = smov [#allocation7]  }
   0x9   :  { %s49_s16 = sshll.u32 %s377_s15, 4  ;;  %s50_s16 = int_to_ptr.vmem [resolvable:$true] %s49_s16 }
   0xa   :  { %55 = dma.hbm_to_vmem [thread:$0]  %s48_s1, 256, %s50_s16, [#allocation6], %s375_s11, %s375_s11, %s376_s12  }
   0xb   :  { %367 = dma.done.wait [#allocation3], 128  }
   0xc   :  { %368 = vsyncadd [#allocation3], 4294967168 }
   0xd   :  { %369 = dma.done.wait [#allocation6], 272  }
   0xe   :  { %370 = vsyncadd [#allocation6], 4294967024  ;;  %v247_v0 = vld [vmem:[#allocation2] sm:$0xff]   ;;  %vm77_vm0 = vcmask 261120   ;;  %v378_v5 = vmov 32.0   ;;  %v245_v22 = vld [vmem:[#allocation7 + $0x8] sm:$0xff] }
   0xf   :  { %v248_v1 = vunpack.c.l.bf16 %v247_v0  ;;  %v249_v3 = vunpack.c.h.bf16 %v247_v0  ;;  %261 = vrcp.f32 %v378_v5  ;;  %171 = vmatpush.bf16.msra.mxu0 %v245_v22  ;;  %v244_v24 = vld [vmem:[#allocation7] sm:$0xff]  ;;  %v258_v43 = vld [vmem:[%s452_s2] ss:$0 sm:$0xff]  ;;  %s224_s24 = sshll.u32 %s457_s7, 4  ;;  %vm215_vm8 = vcmask 122880   ;;  %s225_s24 = int_to_ptr.hbm [resolvable:$true] %s224_s24 }
  0x10   :  { %v259_v48 = vld [vmem:[%s453_s3] ss:$0 sm:$0xff] }
  0x11   :  { %v78_v2 = vsel %vm77_vm0, %v248_v1, 0.0  ;;  %v81_v4 = vsel %vm77_vm0, %v249_v3, 0.0  ;;  %v260_v53 = vld [vmem:[%s455_s5] ss:$0 sm:$0xff]  ;;  %s379_s5 = smov [#allocation8]  }
  0x12   :  { %79 = vadd.xlane.f32.xlu0 %v78_v2  ;;  %s222_s21 = sshll.u32 %s379_s5, 4  ;;  %s223_s21 = int_to_ptr.vmem [resolvable:$true] %s222_s21 }
  0x13   :  { %172 = vmatpush.bf16.msra.mxu0 %v244_v24 }
  0x15   :  { %v262_v6 = vpop.eup %261 }
  0x16   :  { %v85_v7 = vmul.f32 32.0, %v262_v6  ;;  %vm89_vm1 = vweird.f32 %v262_v6 }
  0x18   :  { %v86_v8 = vsub.f32 1.0, %v85_v7 }
  0x1a   :  { %82 = vadd.xlane.f32.xlu0 %v81_v4  ;;  %v87_v9 = vmul.f32 %v262_v6, %v86_v8 }
  0x1c   :  { %v88_v10 = vadd.f32 %v262_v6, %v87_v9 }
  0x1e   :  { %v90_v11 = vsel %vm89_vm1, %v262_v6, %v88_v10 }
  0x85   :  { %v80_v12 = vpop.xlane.xlu0 %79 }
  0x86   :  { %v91_v13 = vmul.f32 %v90_v11, %v80_v12 }
  0x88   :  { %v93_v14 = vsub.f32 %v248_v1, %v91_v13  ;;  %v197_v13 = vld [vmem:[%s456_s6] sm:$0x1] }
  0x8a   :  { %v95_v15 = vmul.f32 %v93_v14, %v93_v14 }
  0x8c   :  { %v97_v16 = vsel %vm77_vm0, %v95_v15, 0.0 }
  0x8d   :  { %98 = vadd.xlane.f32.xlu1 %v97_v16  ;;  %v83_v17 = vpop.xlane.xlu0 %82 }
  0x8e   :  { %v92_v18 = vmul.f32 %v90_v11, %v83_v17  ;;  %v380_v17 = vmov 0.0  }
  0x90   :  { %v94_v19 = vsub.f32 %v249_v3, %v92_v18 }
  0x92   :  { %v96_v20 = vmul.f32 %v94_v19, %v94_v19 }
  0x94   :  { %v100_v21 = vsel %vm77_vm0, %v96_v20, 0.0 }
  0x95   :  { %101 = vadd.xlane.f32.xlu1 %v100_v21 }
 0x100   :  { %v99_v23 = vpop.xlane.xlu1 %98 }
 0x101   :  { %v103_v25 = vmul.f32 %v99_v23, %v90_v11 }
 0x103   :  { %v105_v26 = vadd.f32 1e-05, %v103_v25 }
 0x105   :  { %263 = vrsqrt.f32 %v105_v26  ;;  %vm113_vm3 = vweird.f32 %v105_v26 }
 0x108   :  { %v102_v27 = vpop.xlane.xlu1 %101 }
 0x109   :  { %v104_v28 = vmul.f32 %v102_v27, %v90_v11 }
 0x10b   :  { %v264_v29 = vpop.eup %263  ;;  %v106_v30 = vadd.f32 1e-05, %v104_v28 }
 0x10c   :  { %v108_v31 = vmul.f32 %v264_v29, %v105_v26  ;;  %vm114_vm2 = vweird.f32 %v264_v29 }
 0x10d   :  { %265 = vrsqrt.f32 %v106_v30  ;;  %vm115_vm4 = vmor %vm113_vm3, %vm114_vm2  ;;  %vm123_vm6 = vweird.f32 %v106_v30 }
 0x10e   :  { %v109_v32 = vmul.f32 %v264_v29, %v108_v31 }
 0x110   :  { %v110_v33 = vmul.f32 0.5, %v109_v32 }
 0x112   :  { %v111_v34 = vsub.f32 1.5, %v110_v33 }
 0x113   :  { %v266_v35 = vpop.eup %265 }
 0x114   :  { %v112_v36 = vmul.f32 %v264_v29, %v111_v34  ;;  %v118_v37 = vmul.f32 %v266_v35, %v106_v30  ;;  %vm124_vm5 = vweird.f32 %v266_v35 }
 0x115   :  { %vm125_vm7 = vmor %vm123_vm6, %vm124_vm5 }
 0x116   :  { %v119_v38 = vmul.f32 %v266_v35, %v118_v37  ;;  %v116_v39 = vsel %vm115_vm4, %v264_v29, %v112_v36 }
 0x117   :  { %v127_v42 = vmul.f32 %v116_v39, %v93_v14  ;;  %v199_v14 = vld [vmem:[#allocation5] sm:$0x1] }
 0x118   :  { %v120_v40 = vmul.f32 0.5, %v119_v38 }
 0x119   :  { %v133_v47 = vmul.f32 %v258_v43, %v127_v42 }
 0x11a   :  { %v121_v41 = vsub.f32 1.5, %v120_v40 }
 0x11b   :  { %v139_v50 = vadd.f32 %v259_v48, %v133_v47 }
 0x11c   :  { %v122_v44 = vmul.f32 %v266_v35, %v121_v41 }
 0x11e   :  { %v126_v45 = vsel %vm125_vm7, %v266_v35, %v122_v44 }
 0x11f   :  { %v128_v46 = vmul.f32 %v126_v45, %v94_v19 }
 0x121   :  { %v134_v49 = vmul.f32 %v258_v43, %v128_v46 }
 0x123   :  { %v140_v51 = vadd.f32 %v259_v48, %v134_v49 }
 0x125   :  { %v141_v52 = vpack.c.bf16 %v140_v51, %v139_v50 }
 0x127   :  { %243 = vmatmul.msk.bf16.vlgmr.msra.gmra.mxu0 %vm77_vm0, %v141_v52 }
 0x1a4   :  { %v174_v54 = vpop.f32.mrf.mxu0 }
 0x1a5   :  { %v175_v55 = vadd.f32 %v260_v53, %v174_v54 }
 0x1a7   :  { %v179_v56 = vmul.f32 %v175_v55, %v175_v55 }
 0x1a9   :  { %v181_v57 = vmul.f32 %v179_v56, %v175_v55 }
 0x1ab   :  { %v183_v58 = vmul.f32 0.044715, %v181_v57 }
 0x1ac   :  { %v176_v59 = vpop.f32.mrf.mxu0 }
 0x1ad   :  { %v177_v60 = vadd.f32 %v260_v53, %v176_v59  ;;  %v185_v61 = vadd.f32 %v183_v58, %v175_v55 }
 0x1af   :  { %v180_v62 = vmul.f32 %v177_v60, %v177_v60  ;;  %v187_v63 = vmul.f32 0.7978846, %v185_v61 }
 0x1b1   :  { %v182_v0 = vmul.f32 %v180_v62, %v177_v60  ;;  %267 = vtanh.f32 %v187_v63 }
 0x1b3   :  { %v184_v1 = vmul.f32 0.044715, %v182_v0 }
 0x1b5   :  { %v186_v2 = vadd.f32 %v184_v1, %v177_v60 }
 0x1b7   :  { %v188_v3 = vmul.f32 0.7978846, %v186_v2  ;;  %v268_v4 = vpop.eup %267 }
 0x1b8   :  { %v191_v5 = vadd.f32 1.0, %v268_v4 }
 0x1b9   :  { %269 = vtanh.f32 %v188_v3 }
 0x1ba   :  { %v193_v8 = vmul.f32 0.5, %v191_v5 }
 0x1bc   :  { %v195_v10 = vmul.f32 %v193_v8, %v175_v55 }
 0x1bf   :  { %v270_v6 = vpop.eup %269 }
 0x1c0   :  { %v192_v7 = vadd.f32 1.0, %v270_v6 }
 0x1c2   :  { %v194_v9 = vmul.f32 0.5, %v192_v7 }
 0x1c4   :  { %v196_v11 = vmul.f32 %v194_v9, %v177_v60 }
 0x1c6   :  { %v198_v12 = vpack.c.bf16 %v196_v11, %v195_v10 }
 0x1c8   :  { %207 = vmatpush.bf16.xpose.msra.mxu1 %v198_v12 }
 0x1cf   :  { %208 = vmatmul.bf16.vlgmr.msra.gmra.mxu1 %v197_v13 }
 0x24c   :  { %v209_v15 = vpop.f32.mrf.mxu1 }
 0x24d   :  { %v210_v16 = vadd.f32 %v209_v15, %v199_v14 }
 0x24f   :  { %vm213_vm9 = vcmp.ge.f32.partialorder %v210_v16, 0.0 }
 0x250   :  { %v214_v18 = vsel %vm213_vm9, 1.0, %v380_v17 }
 0x251   :  { %216 = vst.msk [vmem:[#allocation8] sm:$0x1] %vm215_vm8, %v214_v18 }
 0x252   :  { %227 = dma.vmem_to_hbm [thread:$0]  %s223_s21, 16, %s225_s24, [#allocation4]  }
 0x254   :  { %v211_v19 = vpop.f32.mrf.mxu1 }
 0x255   :  { %371 = dma.done.wait [#allocation4], 16  }
 0x256   :  { %372 = vsyncadd [#allocation4], 4294967280 }
 0x257   :  { %232 = vsyncpa [#allocation3], 1 }
 0x258   :  { %233 = vsyncpa [#allocation6], 1 }
 0x259   :  { %234 = vsyncpa [#allocation4], 1 }

// kernel: tpu_custom_call.1
= control target key start
LH: loop header
LB: loop body
LE: loop exit
PB: predicated region body
PF: predicated region fallthrough
CT: control target
= control target key end

     0   :  { %12 = vsyncpa [#allocation3], 0  ;;  %s450_s0 = inlined_call_operand.hbm [shape: bf16[16,32], index: 0, kind: input, shape index: {}]   ;;  %s451_s1 = inlined_call_operand.hbm [shape: f32[1,1,16], index: 1, kind: input, shape index: {}]   ;;  %s452_s2 = inlined_call_operand.vmem [shape: f32[1,32], index: 2, kind: input, shape index: {}]   ;;  %s453_s3 = inlined_call_operand.vmem [shape: f32[1,32], index: 3, kind: input, shape index: {}]   ;;  %s454_s4 = inlined_call_operand.hbm [shape: bf16[32,128], index: 4, kind: input, shape index: {}]   ;;  %s455_s5 = inlined_call_operand.vmem [shape: f32[1,128], index: 5, kind: input, shape index: {}]   ;;  %s456_s6 = inlined_call_operand.vmem [shape: bf16[1,128], index: 6, kind: input, shape index: {}]   ;;  %s457_s7 = inlined_call_operand.hbm [shape: f32[1,1,16], index: 7, kind: output, shape index: {}]  }
   0x1   :  { %13 = vsyncpa [#allocation6], 0  ;;  %s33_s26 = sshll.u32 %s451_s1, 4  ;;  %s34_s26 = int_to_ptr.hbm [resolvable:$true] %s33_s26 }
   0x2   :  { %14 = vsyncpa [#allocation4], 0  ;;  %s373_s27 = smov [#allocation5]   ;;  %s19_s8 = sshll.u32 %s450_s0, 4  ;;  %s20_s8 = int_to_ptr.hbm [resolvable:$true] %s19_s8 }
   0x3   :  { %s35_s28 = sshll.u32 %s373_s27, 4  ;;  %s374_s9 = smov [#allocation2]   ;;  %s36_s28 = int_to_ptr.vmem [resolvable:$true] %s35_s28 }
   0x4   :  { %38 = dma.hbm_to_vmem [thread:$0]  %s34_s26, 16, %s36_s28, [#allocation6]  }
   0x5   :  { %s21_s10 = sshll.u32 %s374_s9, 4  ;;  %s375_s11 = smov 64   ;;  %s22_s10 = int_to_ptr.vmem [resolvable:$true] %s21_s10 }
   0x6   :  { %s376_s12 = smov 4   ;;  %s47_s1 = sshll.u32 %s454_s4, 4  ;;  %s48_s1 = int_to_ptr.hbm [resolvable:$true] %s47_s1 }
   0x7   :  { %27 = dma.hbm_to_vmem [thread:$0]  %s20_s8, 128, %s22_s10, [#allocation3], %s375_s11, %s375_s11, %s376_s12  }
   0x8   :  { %s377_s15 = smov [#allocation7]  }
   0x9   :  { %s49_s16 = sshll.u32 %s377_s15, 4  ;;  %s50_s16 = int_to_ptr.vmem [resolvable:$true] %s49_s16 }
   0xa   :  { %55 = dma.hbm_to_vmem [thread:$0]  %s48_s1, 256, %s50_s16, [#allocation6], %s375_s11, %s375_s11, %s376_s12  }
   0xb   :  { %367 = dma.done.wait [#allocation3], 128  }
   0xc   :  { %368 = vsyncadd [#allocation3], 4294967168 }
   0xd   :  { %369 = dma.done.wait [#allocation6], 272  }
   0xe   :  { %370 = vsyncadd [#allocation6], 4294967024  ;;  %v247_v0 = vld [vmem:[#allocation2] sm:$0xff]   ;;  %vm77_vm0 = vcmask 261120   ;;  %v378_v5 = vmov 32.0   ;;  %v245_v22 = vld [vmem:[#allocation7 + $0x8] sm:$0xff] }
   0xf   :  { %v248_v1 = vunpack.c.l.bf16 %v247_v0  ;;  %v249_v3 = vunpack.c.h.bf16 %v247_v0  ;;  %261 = vrcp.f32 %v378_v5  ;;  %171 = vmatpush.bf16.msra.mxu0 %v245_v22  ;;  %v244_v24 = vld [vmem:[#allocation7] sm:$0xff]  ;;  %v258_v43 = vld [vmem:[%s452_s2] ss:$0 sm:$0xff]  ;;  %s224_s24 = sshll.u32 %s457_s7, 4  ;;  %vm215_vm8 = vcmask 122880   ;;  %s225_s24 = int_to_ptr.hbm [resolvable:$true] %s224_s24 }
  0x10   :  { %v259_v48 = vld [vmem:[%s453_s3] ss:$0 sm:$0xff] }
  0x11   :  { %v78_v2 = vsel %vm77_vm0, %v248_v1, 0.0  ;;  %v81_v4 = vsel %vm77_vm0, %v249_v3, 0.0  ;;  %v260_v53 = vld [vmem:[%s455_s5] ss:$0 sm:$0xff]  ;;  %s379_s5 = smov [#allocation8]  }
  0x12   :  { %79 = vadd.xlane.f32.xlu0 %v78_v2  ;;  %s222_s21 = sshll.u32 %s379_s5, 4  ;;  %s223_s21 = int_to_ptr.vmem [resolvable:$true] %s222_s21 }
  0x13   :  { %172 = vmatpush.bf16.msra.mxu0 %v244_v24 }
  0x15   :  { %v262_v6 = vpop.eup %261 }
  0x16   :  { %v85_v7 = vmul.f32 32.0, %v262_v6  ;;  %vm89_vm1 = vweird.f32 %v262_v6 }
  0x18   :  { %v86_v8 = vsub.f32 1.0, %v85_v7 }
  0x1a   :  { %82 = vadd.xlane.f32.xlu0 %v81_v4  ;;  %v87_v9 = vmul.f32 %v262_v6, %v86_v8 }
  0x1c   :  { %v88_v10 = vadd.f32 %v262_v6, %v87_v9 }
  0x1e   :  { %v90_v11 = vsel %vm89_vm1, %v262_v6, %v88_v10 }
  0x85   :  { %v80_v12 = vpop.xlane.xlu0 %79 }
  0x86   :  { %v91_v13 = vmul.f32 %v90_v11, %v80_v12 }
  0x88   :  { %v93_v14 = vsub.f32 %v248_v1, %v91_v13  ;;  %v197_v13 = vld [vmem:[%s456_s6] sm:$0x1] }
  0x8a   :  { %v95_v15 = vmul.f32 %v93_v14, %v93_v14 }
  0x8c   :  { %v97_v16 = vsel %vm77_vm0, %v95_v15, 0.0 }
  0x8d   :  { %98 = vadd.xlane.f32.xlu1 %v97_v16  ;;  %v83_v17 = vpop.xlane.xlu0 %82 }
  0x8e   :  { %v92_v18 = vmul.f32 %v90_v11, %v83_v17  ;;  %v380_v17 = vmov 0.0  }
  0x90   :  { %v94_v19 = vsub.f32 %v249_v3, %v92_v18 }
  0x92   :  { %v96_v20 = vmul.f32 %v94_v19, %v94_v19 }
  0x94   :  { %v100_v21 = vsel %vm77_vm0, %v96_v20, 0.0 }
  0x95   :  { %101 = vadd.xlane.f32.xlu1 %v100_v21 }
 0x100   :  { %v99_v23 = vpop.xlane.xlu1 %98 }
 0x101   :  { %v103_v25 = vmul.f32 %v99_v23, %v90_v11 }
 0x103   :  { %v105_v26 = vadd.f32 1e-05, %v103_v25 }
 0x105   :  { %263 = vrsqrt.f32 %v105_v26  ;;  %vm113_vm3 = vweird.f32 %v105_v26 }
 0x108   :  { %v102_v27 = vpop.xlane.xlu1 %101 }
 0x109   :  { %v104_v28 = vmul.f32 %v102_v27, %v90_v11 }
 0x10b   :  { %v264_v29 = vpop.eup %263  ;;  %v106_v30 = vadd.f32 1e-05, %v104_v28 }
 0x10c   :  { %v108_v31 = vmul.f32 %v264_v29, %v105_v26  ;;  %vm114_vm2 = vweird.f32 %v264_v29 }
 0x10d   :  { %265 = vrsqrt.f32 %v106_v30  ;;  %vm115_vm4 = vmor %vm113_vm3, %vm114_vm2  ;;  %vm123_vm6 = vweird.f32 %v106_v30 }
 0x10e   :  { %v109_v32 = vmul.f32 %v264_v29, %v108_v31 }
 0x110   :  { %v110_v33 = vmul.f32 0.5, %v109_v32 }
 0x112   :  { %v111_v34 = vsub.f32 1.5, %v110_v33 }
 0x113   :  { %v266_v35 = vpop.eup %265 }
 0x114   :  { %v112_v36 = vmul.f32 %v264_v29, %v111_v34  ;;  %v118_v37 = vmul.f32 %v266_v35, %v106_v30  ;;  %vm124_vm5 = vweird.f32 %v266_v35 }
 0x115   :  { %vm125_vm7 = vmor %vm123_vm6, %vm124_vm5 }
 0x116   :  { %v119_v38 = vmul.f32 %v266_v35, %v118_v37  ;;  %v116_v39 = vsel %vm115_vm4, %v264_v29, %v112_v36 }
 0x117   :  { %v127_v42 = vmul.f32 %v116_v39, %v93_v14  ;;  %v199_v14 = vld [vmem:[#allocation5] sm:$0x1] }
 0x118   :  { %v120_v40 = vmul.f32 0.5, %v119_v38 }
 0x119   :  { %v133_v47 = vmul.f32 %v258_v43, %v127_v42 }
 0x11a   :  { %v121_v41 = vsub.f32 1.5, %v120_v40 }
 0x11b   :  { %v139_v50 = vadd.f32 %v259_v48, %v133_v47 }
 0x11c   :  { %v122_v44 = vmul.f32 %v266_v35, %v121_v41 }
 0x11e   :  { %v126_v45 = vsel %vm125_vm7, %v266_v35, %v122_v44 }
 0x11f   :  { %v128_v46 = vmul.f32 %v126_v45, %v94_v19 }
 0x121   :  { %v134_v49 = vmul.f32 %v258_v43, %v128_v46 }
 0x123   :  { %v140_v51 = vadd.f32 %v259_v48, %v134_v49 }
 0x125   :  { %v141_v52 = vpack.c.bf16 %v140_v51, %v139_v50 }
 0x127   :  { %243 = vmatmul.msk.bf16.vlgmr.msra.gmra.mxu0 %vm77_vm0, %v141_v52 }
 0x1a4   :  { %v174_v54 = vpop.f32.mrf.mxu0 }
 0x1a5   :  { %v175_v55 = vadd.f32 %v260_v53, %v174_v54 }
 0x1a7   :  { %v179_v56 = vmul.f32 %v175_v55, %v175_v55 }
 0x1a9   :  { %v181_v57 = vmul.f32 %v179_v56, %v175_v55 }
 0x1ab   :  { %v183_v58 = vmul.f32 0.044715, %v181_v57 }
 0x1ac   :  { %v176_v59 = vpop.f32.mrf.mxu0 }
 0x1ad   :  { %v177_v60 = vadd.f32 %v260_v53, %v176_v59  ;;  %v185_v61 = vadd.f32 %v183_v58, %v175_v55 }
 0x1af   :  { %v180_v62 = vmul.f32 %v177_v60, %v177_v60  ;;  %v187_v63 = vmul.f32 0.7978846, %v185_v61 }
 0x1b1   :  { %v182_v0 = vmul.f32 %v180_v62, %v177_v60  ;;  %267 = vtanh.f32 %v187_v63 }
 0x1b3   :  { %v184_v1 = vmul.f32 0.044715, %v182_v0 }
 0x1b5   :  { %v186_v2 = vadd.f32 %v184_v1, %v177_v60 }
 0x1b7   :  { %v188_v3 = vmul.f32 0.7978846, %v186_v2  ;;  %v268_v4 = vpop.eup %267 }
 0x1b8   :  { %v191_v5 = vadd.f32 1.0, %v268_v4 }
 0x1b9   :  { %269 = vtanh.f32 %v188_v3 }
 0x1ba   :  { %v193_v8 = vmul.f32 0.5, %v191_v5 }
 0x1bc   :  { %v195_v10 = vmul.f32 %v193_v8, %v175_v55 }
 0x1bf   :  { %v270_v6 = vpop.eup %269 }
 0x1c0   :  { %v192_v7 = vadd.f32 1.0, %v270_v6 }
 0x1c2   :  { %v194_v9 = vmul.f32 0.5, %v192_v7 }
 0x1c4   :  { %v196_v11 = vmul.f32 %v194_v9, %v177_v60 }
 0x1c6   :  { %v198_v12 = vpack.c.bf16 %v196_v11, %v195_v10 }
 0x1c8   :  { %207 = vmatpush.bf16.xpose.msra.mxu1 %v198_v12 }
 0x1cf   :  { %208 = vmatmul.bf16.vlgmr.msra.gmra.mxu1 %v197_v13 }
 0x24c   :  { %v209_v15 = vpop.f32.mrf.mxu1 }
 0x24d   :  { %v210_v16 = vadd.f32 %v209_v15, %v199_v14 }
 0x24f   :  { %vm213_vm9 = vcmp.ge.f32.partialorder %v210_v16, 0.0 }
 0x250   :  { %v214_v18 = vsel %vm213_vm9, 1.0, %v380_v17 }
 0x251   :  { %216 = vst.msk [vmem:[#allocation8] sm:$0x1] %vm215_vm8, %v214_v18 }
 0x252   :  { %227 = dma.vmem_to_hbm [thread:$0]  %s223_s21, 16, %s225_s24, [#allocation4]  }
 0x254   :  { %v211_v19 = vpop.f32.mrf.mxu1 }
 0x255   :  { %371 = dma.done.wait [#allocation4], 16  }
 0x256   :  { %372 = vsyncadd [#allocation4], 4294967280 }
 0x257   :  { %232 = vsyncpa [#allocation3], 1 }
 0x258   :  { %233 = vsyncpa [#allocation6], 1 }
 0x259   :  { %234 = vsyncpa [#allocation4], 1 }

</bundles_post_ra>
